<compile_context>
chip_gen: v5e
topology: v5e:2x2
jax: 0.10.0
libtpu: 0.0.40
codegen_flags: <defaults>
</compile_context>

<pallas_src>
import jax
import jax.numpy as jnp
from jax import lax
from jax.experimental import pallas as pl
from jax.experimental.pallas import tpu as pltpu

_QUANTILES = (0.0, 0.25, 0.5, 0.75, 1.0)


def _quantile_pool_kernel(lengths_ref, x_ref, out_ref):
    # lengths_ref: (B,) int32 in SMEM (scalar prefetch)
    # x_ref:       (1, CT, T) input block in VMEM (native dtype)
    # out_ref:     (1, 5, CT) output block in VMEM (rows: q = 0, .25, .5, .75, 1)
    b = pl.program_id(0)
    L = lengths_ref[b]                             # valid steps for this batch row

    x = x_ref[0].astype(jnp.float32)               # (CT, T) upcast per block
    CT, T = x.shape

    t_idx = lax.broadcasted_iota(jnp.int32, (CT, T), 1)
    valid = t_idx < L                              # (CT, T)

    # Select-style masking (NaN-safe if padding contains NaN).
    x_lo = jnp.where(valid, x, jnp.inf)            # padded -> +inf (min / ranks)
    x_hi = jnp.where(valid, x, -jnp.inf)           # padded -> -inf (max)

    # q = 0 and q = 1: cheap masked reductions.
    xmin = jnp.min(x_lo, axis=1)                   # (CT,)
    xmax = jnp.max(x_hi, axis=1)                   # (CT,)

    # Stable ranks of every element:
    #   rank_i = #{valid j : x_j < x_i} + #{j < i : x_j == x_i}
    # Valid elements receive a permutation of 0..L-1; padded elements get rank L.
    # Loop only over the valid prefix -> no wasted work on ragged batches.
    def body(j, carry):
        less, eq_before = carry
        # Column j (valid, finite), extracted with a masked lane reduce.
        vj = jnp.sum(jnp.where(t_idx == j, x_lo, 0.0), axis=1, keepdims=True)  # (CT, 1)
        less = less + (vj < x_lo).astype(jnp.int32)
        eq_before = eq_before + ((vj == x_lo) & (t_idx > j)).astype(jnp.int32)
        return less, eq_before

    zeros = jnp.zeros((CT, T), jnp.int32)
    less, eq_before = lax.fori_loop(0, L, body, (zeros, zeros))
    rank = less + eq_before                        # (CT, T) int32

    def order_stat(k):
        # Exactly one valid element has rank == k for 0 <= k < L.
        return jnp.sum(jnp.where(rank == k, x_lo, 0.0), axis=1)   # (CT,)

    # Interior quantiles with torch-style linear interpolation:
    #   pos = q*(L-1);  v = v[floor(pos)] + frac*(v[floor(pos)+1] - v[floor(pos)])
    Lm1 = L - 1
    Lm1_f = Lm1.astype(jnp.float32)

    def interp_quantile(q):
        pos = jnp.float32(q) * Lm1_f
        k = jnp.floor(pos).astype(jnp.int32)
        frac = pos - k.astype(jnp.float32)
        k1 = jnp.minimum(k + 1, Lm1)
        v0 = order_stat(k)
        v1 = order_stat(k1)
        return v0 + frac * (v1 - v0)

    q25 = interp_quantile(0.25)
    q50 = interp_quantile(0.50)
    q75 = interp_quantile(0.75)

    # Direct slice writes (no lane-axis concatenate / extra VMEM copy).
    out_ref[0, 0, :] = xmin.astype(out_ref.dtype)
    out_ref[0, 1, :] = q25.astype(out_ref.dtype)
    out_ref[0, 2, :] = q50.astype(out_ref.dtype)
    out_ref[0, 3, :] = q75.astype(out_ref.dtype)
    out_ref[0, 4, :] = xmax.astype(out_ref.dtype)


def quantile_pool_1d(x, lengths, *, interpret=False):
    """x: (B, C, T) float, lengths: (B,) int (all in [1, T]) -> (B, 5*C) float.

    Matches QuantilePool1D(dim_to_reduce=2): quantiles [0, .25, .5, .75, 1] over
    the valid T prefix, flattened quantile-major (out[b, q*C + c]).
    """
    B, C, T = x.shape
    lengths = lengths.astype(jnp.int32).reshape(B)

    # Channel tiling: lane-dense (multiple of 128) when C allows, otherwise the
    # full channel extent (the only other legal block size for the lane dim).
    c_tile = 128 if (C % 128 == 0) else C
    grid = (B, C // c_tile)

    out = pl.pallas_call(
        _quantile_pool_kernel,
        out_shape=jax.ShapeDtypeStruct((B, 5, C), x.dtype),
        grid_spec=pltpu.PrefetchScalarGridSpec(
            num_scalar_prefetch=1,                                    # lengths -> SMEM
            grid=grid,
            in_specs=[
                pl.BlockSpec((1, c_tile, T), lambda b, cj, lens: (b, cj, 0)),
            ],
            out_specs=pl.BlockSpec((1, 5, c_tile), lambda b, cj, lens: (b, 0, cj)),
        ),
        compiler_params=pltpu.CompilerParams(
            # Both grid axes are independent -> shard across TensorCores (v7x).
            dimension_semantics=("parallel", "parallel"),
        ),
        interpret=interpret,
    )(lengths, x)

    # (B, 5, C) -> (B, 5*C): row-major flatten reproduces the PyTorch
    # transpose+flatten (quantile-major) layout. Parameter-free glue only.
    return out.reshape(B, 5 * C)


def _reference(x, lengths):
    # Plain-JAX reference mirroring the PyTorch loop-over-batches semantics.
    q = jnp.array(_QUANTILES, dtype=jnp.float32)
    outs = []
    for b in range(x.shape[0]):
        L = int(lengths[b])
        view = x[b, :, :L]                       # (C, L)
        quant = jnp.quantile(view, q, axis=1)    # (5, C), linear interpolation
        outs.append(quant.reshape(-1))           # quantile-major flatten
    return jnp.stack(outs)


if __name__ == "__main__":
    key = jax.random.PRNGKey(0)
    B, C, T = 2, 4, 16
    x = jax.random.normal(key, (B, C, T), dtype=jnp.float32)
    lengths = jnp.array([16, 10], dtype=jnp.int32)   # all in [1, T]

    out = quantile_pool_1d(x, lengths)
    out = jax.block_until_ready(out)

    ref = _reference(x, lengths)
    assert out.shape == (B, 5 * C), out.shape
    assert jnp.allclose(out, ref, atol=1e-5, rtol=1e-5), (out, ref)

    print("KERNEL_OK")
</pallas_src>

<mosaic_0001>
module attributes {stable_mosaic.version = 11 : i64} {
  func.func @_quantile_pool_kernel(%arg0: i32, %arg1: i32, %arg2: memref<2xi32, #tpu.memory_space<smem>>, %arg3: memref<1x4x16xf32, #tpu.memory_space<vmem>>, %arg4: memref<1x5x4xf32, #tpu.memory_space<vmem>>) attributes {dimension_semantics = [#tpu.dimension_semantics<parallel>, #tpu.dimension_semantics<parallel>], iteration_bounds = array<i64: 2, 1>, scalar_prefetch = 1 : i64, scratch_operands = 0 : i64, tpu.core_type = #tpu.core_type<tc>, window_params = [{transform_indices = @transform_0, window_bounds = array<i64: 1, 4, 16>}, {transform_indices = @transform_1, window_bounds = array<i64: 1, 5, 4>}]} {
    %0 = arith.index_cast %arg0 : i32 to index
    %1 = memref.load %arg2[%0] : memref<2xi32, #tpu.memory_space<smem>>
    %c0 = arith.constant 0 : index
    %c0_0 = arith.constant 0 : index
    %c0_1 = arith.constant 0 : index
    %2 = vector.load %arg3[%c0, %c0_0, %c0_1] : memref<1x4x16xf32, #tpu.memory_space<vmem>>, vector<1x4x16xf32>
    %3 = vector.shape_cast %2 : vector<1x4x16xf32> to vector<4x16xf32>
    %4 = tpu.iota {dimensions = array<i32: 1>} : vector<4x16xi32>
    %5 = vector.broadcast %1 : i32 to vector<4x16xi32>
    %6 = arith.cmpi slt, %4, %5 : vector<4x16xi32>
    %cst = arith.constant 0x7F800000 : f32
    %7 = vector.broadcast %cst : f32 to vector<4x16xf32>
    %8 = arith.select %6, %3, %7 : vector<4x16xi1>, vector<4x16xf32>
    %cst_2 = arith.constant 0xFF800000 : f32
    %9 = vector.broadcast %cst_2 : f32 to vector<4x16xf32>
    %10 = arith.select %6, %3, %9 : vector<4x16xi1>, vector<4x16xf32>
    %cst_3 = arith.constant dense<0x7F800000> : vector<4xf32>
    %11 = vector.multi_reduction <minimumf>, %8, %cst_3 [1] : vector<4x16xf32> to vector<4xf32>
    %cst_4 = arith.constant dense<0xFF800000> : vector<4xf32>
    %12 = vector.multi_reduction <maximumf>, %10, %cst_4 [1] : vector<4x16xf32> to vector<4xf32>
    %c0_i32 = arith.constant 0 : i32
    %13 = vector.broadcast %c0_i32 : i32 to vector<4x16xi32>
    %c0_i32_5 = arith.constant 0 : i32
    %14 = arith.subi %1, %c0_i32_5 : i32
    %15 = arith.addi %c0_i32_5, %14 : i32
    %c1_i32 = arith.constant 1 : i32
    %16:2 = scf.for %arg5 = %c0_i32_5 to %15 step %c1_i32 iter_args(%arg6 = %13, %arg7 = %13) -> (vector<4x16xi32>, vector<4x16xi32>)  : i32 {
      %98 = vector.broadcast %arg5 : i32 to vector<4x16xi32>
      %99 = arith.cmpi eq, %4, %98 : vector<4x16xi32>
      %cst_36 = arith.constant 0.000000e+00 : f32
      %100 = vector.broadcast %cst_36 : f32 to vector<4x16xf32>
      %101 = arith.select %99, %8, %100 : vector<4x16xi1>, vector<4x16xf32>
      %cst_37 = arith.constant dense<0.000000e+00> : vector<4xf32>
      %102 = vector.multi_reduction <add>, %101, %cst_37 [1] : vector<4x16xf32> to vector<4xf32>
      %103 = vector.shape_cast %102 : vector<4xf32> to vector<4x1xf32>
      %104 = vector.broadcast %103 : vector<4x1xf32> to vector<4x16xf32>
      %105 = arith.cmpf olt, %104, %8 : vector<4x16xf32>
      %106 = arith.extui %105 : vector<4x16xi1> to vector<4x16xi32>
      %107 = arith.addi %arg6, %106 : vector<4x16xi32>
      %108 = vector.broadcast %103 : vector<4x1xf32> to vector<4x16xf32>
      %109 = arith.cmpf oeq, %108, %8 : vector<4x16xf32>
      %110 = vector.broadcast %arg5 : i32 to vector<4x16xi32>
      %111 = arith.cmpi sgt, %4, %110 : vector<4x16xi32>
      %112 = arith.andi %109, %111 : vector<4x16xi1>
      %113 = arith.extui %112 : vector<4x16xi1> to vector<4x16xi32>
      %114 = arith.addi %arg7, %113 : vector<4x16xi32>
      scf.yield %107, %114 : vector<4x16xi32>, vector<4x16xi32>
    }
    %17 = arith.addi %16#0, %16#1 : vector<4x16xi32>
    %c1_i32_6 = arith.constant 1 : i32
    %18 = arith.subi %1, %c1_i32_6 : i32
    %19 = arith.sitofp %18 : i32 to f32
    %cst_7 = arith.constant 2.500000e-01 : f32
    %20 = arith.mulf %cst_7, %19 : f32
    %21 = math.floor %20 : f32
    %22 = arith.fptosi %21 : f32 to i32
    %23 = arith.sitofp %22 : i32 to f32
    %24 = arith.subf %20, %23 : f32
    %c1_i32_8 = arith.constant 1 : i32
    %25 = arith.addi %22, %c1_i32_8 : i32
    %26 = arith.minsi %25, %18 : i32
    %27 = vector.broadcast %22 : i32 to vector<4x16xi32>
    %28 = arith.cmpi eq, %17, %27 : vector<4x16xi32>
    %cst_9 = arith.constant 0.000000e+00 : f32
    %29 = vector.broadcast %cst_9 : f32 to vector<4x16xf32>
    %30 = arith.select %28, %8, %29 : vector<4x16xi1>, vector<4x16xf32>
    %cst_10 = arith.constant dense<0.000000e+00> : vector<4xf32>
    %31 = vector.multi_reduction <add>, %30, %cst_10 [1] : vector<4x16xf32> to vector<4xf32>
    %32 = vector.broadcast %26 : i32 to vector<4x16xi32>
    %33 = arith.cmpi eq, %17, %32 : vector<4x16xi32>
    %cst_11 = arith.constant 0.000000e+00 : f32
    %34 = vector.broadcast %cst_11 : f32 to vector<4x16xf32>
    %35 = arith.select %33, %8, %34 : vector<4x16xi1>, vector<4x16xf32>
    %cst_12 = arith.constant dense<0.000000e+00> : vector<4xf32>
    %36 = vector.multi_reduction <add>, %35, %cst_12 [1] : vector<4x16xf32> to vector<4xf32>
    %37 = arith.subf %36, %31 : vector<4xf32>
    %38 = vector.broadcast %24 : f32 to vector<4xf32>
    %39 = arith.mulf %38, %37 : vector<4xf32>
    %40 = arith.addf %31, %39 : vector<4xf32>
    %cst_13 = arith.constant 5.000000e-01 : f32
    %41 = arith.mulf %cst_13, %19 : f32
    %42 = math.floor %41 : f32
    %43 = arith.fptosi %42 : f32 to i32
    %44 = arith.sitofp %43 : i32 to f32
    %45 = arith.subf %41, %44 : f32
    %c1_i32_14 = arith.constant 1 : i32
    %46 = arith.addi %43, %c1_i32_14 : i32
    %47 = arith.minsi %46, %18 : i32
    %48 = vector.broadcast %43 : i32 to vector<4x16xi32>
    %49 = arith.cmpi eq, %17, %48 : vector<4x16xi32>
    %cst_15 = arith.constant 0.000000e+00 : f32
    %50 = vector.broadcast %cst_15 : f32 to vector<4x16xf32>
    %51 = arith.select %49, %8, %50 : vector<4x16xi1>, vector<4x16xf32>
    %cst_16 = arith.constant dense<0.000000e+00> : vector<4xf32>
    %52 = vector.multi_reduction <add>, %51, %cst_16 [1] : vector<4x16xf32> to vector<4xf32>
    %53 = vector.broadcast %47 : i32 to vector<4x16xi32>
    %54 = arith.cmpi eq, %17, %53 : vector<4x16xi32>
    %cst_17 = arith.constant 0.000000e+00 : f32
    %55 = vector.broadcast %cst_17 : f32 to vector<4x16xf32>
    %56 = arith.select %54, %8, %55 : vector<4x16xi1>, vector<4x16xf32>
    %cst_18 = arith.constant dense<0.000000e+00> : vector<4xf32>
    %57 = vector.multi_reduction <add>, %56, %cst_18 [1] : vector<4x16xf32> to vector<4xf32>
    %58 = arith.subf %57, %52 : vector<4xf32>
    %59 = vector.broadcast %45 : f32 to vector<4xf32>
    %60 = arith.mulf %59, %58 : vector<4xf32>
    %61 = arith.addf %52, %60 : vector<4xf32>
    %cst_19 = arith.constant 7.500000e-01 : f32
    %62 = arith.mulf %cst_19, %19 : f32
    %63 = math.floor %62 : f32
    %64 = arith.fptosi %63 : f32 to i32
    %65 = arith.sitofp %64 : i32 to f32
    %66 = arith.subf %62, %65 : f32
    %c1_i32_20 = arith.constant 1 : i32
    %67 = arith.addi %64, %c1_i32_20 : i32
    %68 = arith.minsi %67, %18 : i32
    %69 = vector.broadcast %64 : i32 to vector<4x16xi32>
    %70 = arith.cmpi eq, %17, %69 : vector<4x16xi32>
    %cst_21 = arith.constant 0.000000e+00 : f32
    %71 = vector.broadcast %cst_21 : f32 to vector<4x16xf32>
    %72 = arith.select %70, %8, %71 : vector<4x16xi1>, vector<4x16xf32>
    %cst_22 = arith.constant dense<0.000000e+00> : vector<4xf32>
    %73 = vector.multi_reduction <add>, %72, %cst_22 [1] : vector<4x16xf32> to vector<4xf32>
    %74 = vector.broadcast %68 : i32 to vector<4x16xi32>
    %75 = arith.cmpi eq, %17, %74 : vector<4x16xi32>
    %cst_23 = arith.constant 0.000000e+00 : f32
    %76 = vector.broadcast %cst_23 : f32 to vector<4x16xf32>
    %77 = arith.select %75, %8, %76 : vector<4x16xi1>, vector<4x16xf32>
    %cst_24 = arith.constant dense<0.000000e+00> : vector<4xf32>
    %78 = vector.multi_reduction <add>, %77, %cst_24 [1] : vector<4x16xf32> to vector<4xf32>
    %79 = arith.subf %78, %73 : vector<4xf32>
    %80 = vector.broadcast %66 : f32 to vector<4xf32>
    %81 = arith.mulf %80, %79 : vector<4xf32>
    %82 = arith.addf %73, %81 : vector<4xf32>
    %c0_25 = arith.constant 0 : index
    %c0_26 = arith.constant 0 : index
    %c0_27 = arith.constant 0 : index
    %83 = vector.load %arg4[%c0_25, %c0_26, %c0_27] : memref<1x5x4xf32, #tpu.memory_space<vmem>>, vector<1x1x4xf32>
    %84 = vector.shape_cast %83 : vector<1x1x4xf32> to vector<4xf32>
    %85 = vector.shape_cast %11 : vector<4xf32> to vector<1x1x4xf32>
    tpu.vector_store %arg4[%c0_25, %c0_26, %c0_27], %85 {strides = array<i32>} : memref<1x5x4xf32, #tpu.memory_space<vmem>>, vector<1x1x4xf32>,
    %c0_28 = arith.constant 0 : index
    %c1 = arith.constant 1 : index
    %c0_29 = arith.constant 0 : index
    %86 = vector.load %arg4[%c0_28, %c1, %c0_29] : memref<1x5x4xf32, #tpu.memory_space<vmem>>, vector<1x1x4xf32>
    %87 = vector.shape_cast %86 : vector<1x1x4xf32> to vector<4xf32>
    %88 = vector.shape_cast %40 : vector<4xf32> to vector<1x1x4xf32>
    tpu.vector_store %arg4[%c0_28, %c1, %c0_29], %88 {strides = array<i32>} : memref<1x5x4xf32, #tpu.memory_space<vmem>>, vector<1x1x4xf32>,
    %c0_30 = arith.constant 0 : index
    %c2 = arith.constant 2 : index
    %c0_31 = arith.constant 0 : index
    %89 = vector.load %arg4[%c0_30, %c2, %c0_31] : memref<1x5x4xf32, #tpu.memory_space<vmem>>, vector<1x1x4xf32>
    %90 = vector.shape_cast %89 : vector<1x1x4xf32> to vector<4xf32>
    %91 = vector.shape_cast %61 : vector<4xf32> to vector<1x1x4xf32>
    tpu.vector_store %arg4[%c0_30, %c2, %c0_31], %91 {strides = array<i32>} : memref<1x5x4xf32, #tpu.memory_space<vmem>>, vector<1x1x4xf32>,
    %c0_32 = arith.constant 0 : index
    %c3 = arith.constant 3 : index
    %c0_33 = arith.constant 0 : index
    %92 = vector.load %arg4[%c0_32, %c3, %c0_33] : memref<1x5x4xf32, #tpu.memory_space<vmem>>, vector<1x1x4xf32>
    %93 = vector.shape_cast %92 : vector<1x1x4xf32> to vector<4xf32>
    %94 = vector.shape_cast %82 : vector<4xf32> to vector<1x1x4xf32>
    tpu.vector_store %arg4[%c0_32, %c3, %c0_33], %94 {strides = array<i32>} : memref<1x5x4xf32, #tpu.memory_space<vmem>>, vector<1x1x4xf32>,
    %c0_34 = arith.constant 0 : index
    %c4 = arith.constant 4 : index
    %c0_35 = arith.constant 0 : index
    %95 = vector.load %arg4[%c0_34, %c4, %c0_35] : memref<1x5x4xf32, #tpu.memory_space<vmem>>, vector<1x1x4xf32>
    %96 = vector.shape_cast %95 : vector<1x1x4xf32> to vector<4xf32>
    %97 = vector.shape_cast %12 : vector<4xf32> to vector<1x1x4xf32>
    tpu.vector_store %arg4[%c0_34, %c4, %c0_35], %97 {strides = array<i32>} : memref<1x5x4xf32, #tpu.memory_space<vmem>>, vector<1x1x4xf32>,
    return
  }
  func.func @transform_0(%arg0: i32, %arg1: i32, %arg2: memref<2xi32, #tpu.memory_space<smem>>) -> (i32, i32, i32) {
    %c0_i32 = arith.constant 0 : i32
    %c0_i32_0 = arith.constant 0 : i32
    return %arg0, %arg1, %c0_i32 : i32, i32, i32
  }
  func.func @transform_1(%arg0: i32, %arg1: i32, %arg2: memref<2xi32, #tpu.memory_space<smem>>) -> (i32, i32, i32) {
    %c0_i32 = arith.constant 0 : i32
    %c0_i32_0 = arith.constant 0 : i32
    return %arg0, %c0_i32, %arg1 : i32, i32, i32
  }
}

</mosaic_0001>

<bundles_post_ra>
// kernel: tpu_custom_call.1
= control target key start
LH: loop header
LB: loop body
LE: loop exit
PB: predicated region body
PF: predicated region fallthrough
CT: control target
= control target key end

     0   :  { %s646_s12 = smov [#allocation3]   ;;  %s851_s0 = inlined_call_operand.hbm [shape: s32[2], index: 0, kind: input, shape index: {}]   ;;  %s852_s1 = inlined_call_operand.hbm [shape: f32[2,4,16], index: 1, kind: input, shape index: {}]   ;;  %s853_s2 = inlined_call_operand.vmem [shape: f32[2,5,4], index: 2, kind: output, shape index: {}]  }
   0x1   :  { %s8_s11 = sshll.u32 %s851_s0, 4  ;;  %s9_s11 = int_to_ptr.hbm [resolvable:$true] %s8_s11 }
   0x2   :  { %11 = dma.hbm_to_smem %s9_s11, 16, %s646_s12, [#allocation2] }
   0x3   :  { %596 = dma.done.wait [#allocation2], 16 }
   0x4   :  { %597 = vsyncadd [#allocation2], 4294967280 }
   0x5   :  { %14 = sfence }
   0x6   :  { %15 = vsyncpa [#allocation5], 0 }
   0x7   :  { %17 = vsyncpa [#allocation5 + $0x1], 0  ;;  %s666_s13 = smov 0   ;;  %s668_s14 = smov 0  }
   0x8   :  { %s670_s15 = smov 0   ;;  %s672_s16 = smov 0  }
   0x9   :  { %s674_s17 = smov 0   ;;  %s676_s18 = smov 0  }
   0xa LB: > { %s394_s0 = sadd.s32 4294967295, %s624_s18   ;;  %s35_s19 = sadd.s32 1, %s620_s17  ;;  %s624_s18 = sphi %s676_s18, %s23_s18   ;;  %s620_s17 = sphi %s674_s17, %s860_s17   ;;  %s616_s16 = sphi %s672_s16, %s859_s16   ;;  %s612_s15 = sphi %s670_s15, %s858_s15   ;;  %s608_s14 = sphi %s668_s14, %s857_s14   ;;  %s604_s13 = sphi %s666_s13, %s856_s13  }
   0xb   : > { %p37_p0 = scmp.ge.s32.totalorder %s35_s19, 2  ;;  %s44_s20 = sadd.s32 1, %s612_s15 }
   0xc   : > { %p51_p1 = scmp.ne.s32.totalorder %s612_s15, %s608_s14  ;;  %p52_p2 = scmp.eq.s32.totalorder %s624_s18, 0 }
   0xd   : > { %s862_s19 = smov (%p37_p0, %s35_s19), 0  ;;  %p57_p4 = scmp.ne.s32.totalorder %s608_s14, %s604_s13 }
   0xe   : > { %p702_p3 = por %p52_p2, %p51_p1  ;;  %s39_s22 = ssub.s32 %s620_s17, %s862_s19 }
   0xf   : > { %p58_p5 = scmp.eq.s32.totalorder %s394_s0, 0  ;;  %p42_p6 = scmp.eq.s32.totalorder %s39_s22, 0 }
  0x10   : > { %p419_p8 = scmp.lt.s32.totalorder %s624_s18, 2  ;;  %s109_s25 = sand.u32 1, %s612_s15  }
  0x11   : > { %p709_p7 = por %p58_p5, %p57_p4  ;;  %s399_s26 = sshll.u32 %s620_s17, 2 }
  0x12   : > { %s715_s24 = scalar_select %p42_p6, %s612_s15, %s44_s20  }
  0x13   : > { %s398_s27 = sshll.u32 %s109_s25, 2  ;;  %s118_s30 = scalar_lea.hbm %s852_s1, %s399_s26 }
  0x14   : > { %s120_s3 = sshll.u32 %s118_s30, 4  ;;  %s113_s4 = scalar_lea.vmem [#allocation4], %s398_s27  ;;  %s121_s3 = int_to_ptr.hbm [resolvable:$true] %s120_s3 }
  0x15   : > { %s122_s5 = sshll.u32 %s113_s4, 4  ;;  %p416_p9 = pnand %p419_p8, %p702_p3  ;;  %s123_s5 = int_to_ptr.vmem [resolvable:$true] %s122_s5 }
  0x16   : > { %p400_p10 = scmp.ge.s32.totalorder %s624_s18, 1  ;;  %p127_p11 = scmp.lt.s32.totalorder %s624_s18, 3 }
  0x17   : > { %s110_s6 = scalar_lea.sflag [#allocation5], %s109_s25 }
  0x18   : > { %418 = dma.hbm_to_vmem [thread:$0]  (!%p416_p9), %s121_s3, 64, %s123_s5, %s110_s6  }
  0x19   : > { %p128_p12 = pnand %p400_p10, %p127_p11 }
  0x1a   : > { %s133_s7 = sand.u32 (!%p128_p12), 1, %s608_s14  }
  0x1b   : > { %131 = sbr.rel (%p128_p12) target bundleno = 441 (0x1b9), region = 24  ;;  %s401_s8 = sshll.u32 (!%p128_p12), %s133_s7, 2 }
  0x1c   : > { %s134_s9 = scalar_lea.sflag (!%p128_p12), [#allocation5], %s133_s7  ;;  %s137_s10 = scalar_lea.vmem (!%p128_p12), [#allocation4], %s401_s8 }
  0x20   : > { %599 = dma.done.wait (%p709_p7), %s134_s9, 64  }
  0x21   : > { %601 = vsyncadd (%p709_p7), %s134_s9, 4294967232  ;;  %v168_v0 = vlaneseq  ;;  %s732_s11 = sld [smem:[#allocation3 + %s616_s16]]  ;;  %p159_p13 = scmp.lt.s32.totalorder %s616_s16, 1  ;;  %v167_v3 = vld [vmem:[%s137_s10] sm:$0xf]  ;;  %vm174_vm0 = vcmask 125952  }
  0x22   : > { %v638_v10 = vmov 0   ;;  %v642_v11 = vmov 0  }
  0x23   : > { %s864_s16 = smov (!%p159_p13, %s616_s16), 1  ;;  %v736_v1 = vand.u32 127, %v168_v0 }
  0x24   : > { %s402_s12 = sshll.u32 %s864_s16, 3 }
  0x25   : > { %s741_s20 = scalar_lea.vmem %s853_s2, %s402_s12 }
  0x27   : > { %v170_v2 = vstv %s732_s11  ;;  %p403_p0 = scmp.le.s32.totalorder %s732_s11, 0 }
  0x28   : > { %vm171_vm1 = vcmp.lt.s32.totalorder %v736_v1, %v170_v2  ;;  %s634_s16 = smov (!%p403_p0), 0  }
  0x29   : > { %v745_v4 = vsel %vm171_vm1, %v167_v3, inf  ;;  %v173_v6 = vsel %vm171_vm1, %v167_v3, -inf }
  0x2a   : > { %v175_v5 = vsel %vm174_vm0, %v745_v4, inf  ;;  %v178_v7 = vsel %vm174_vm0, %v173_v6, -inf }
  0x2b   : > { %176 = vmin.xlane.f32.xlu0 %v175_v5 }
  0x33   : > { %179 = vmax.xlane.f32.xlu0 %v178_v7 }
  0x9e   : > { %v750_v8 = vpop.xlane.xlu0 %176 }
  0xa2   : > { %355 = sbr.rel (%p403_p0) target bundleno = 294 (0x126), region = 65 }
  0xa6   : > { %v752_v9 = vpop.xlane.xlu0 %179 }
  0xa7   : > { %v626_v12 = vmov 0   ;;  %v630_v13 = vmov 0  }
  0xa8 LB: >> { %v189_v14 = vstv %s636_s16  ;;  %v647_v18 = vmov 0   ;;  %s184_s16 = sadd.s32 1, %s636_s16   ;;  %s636_s16 = sphi %s634_s16, %s184_s16   ;;  %v632_v13 = vphi %v630_v13, %v631_v13   ;;  %v628_v12 = vphi %v626_v12, %v627_v12  }
  0xa9   : >> { %vm190_vm2 = vcmp.eq.s32.totalorder %v736_v1, %v189_v14  ;;  %vm199_vm3 = vcmp.gt.s32.totalorder %v736_v1, %v189_v14  ;;  %p183_p1 = scmp.ge.s32.totalorder %s184_s16, %s732_s11 }
  0xaa   : >> { %v191_v15 = vsel %vm190_vm2, %v745_v4, 0.0 }
  0xab   : >> { %v192_v16 = vsel %vm174_vm0, %v191_v15, 0.0 }
  0xac   : >> { %193 = vadd.xlane.f32.xlu0 %v192_v16 }
 0x11f   : >> { %v194_v17 = vpop.xlane.xlu0 %193 }
 0x120   : >> { %vm195_vm4 = vcmp.lt.f32.partialorder %v194_v17, %v745_v4  ;;  %vm198_vm5 = vcmp.eq.f32.partialorder %v194_v17, %v745_v4 }
 0x121   : >> { %v196_v19 = vsel %vm195_vm4, 1, %v647_v18  ;;  %vm200_vm6 = vmand %vm198_vm5, %vm199_vm3  ;;  %186 = sbr.rel (!%p183_p1) target bundleno = 168 (0xa8), region = 71 }
 0x122   : >> { %v197_v20 = vadd.s32 %v632_v13, %v196_v19   ;;  %v201_v21 = vsel %vm200_vm6, 1, %v647_v18 }
 0x123   : >> { %v202_v22 = vadd.s32 %v628_v12, %v201_v21  }
 0x124   : >> { %v631_v13 = vmov %v197_v20   ;;  %v643_v11 = vmov (%p183_p1), %v197_v20  }
 0x125   : >> { %v627_v12 = vmov %v202_v22   ;;  %v639_v10 = vmov (%p183_p1), %v202_v22  }
 0x126 PF: > { %s763_s21 = sadd.s32 4294967295, %s732_s11  ;;  %v203_v23 = vadd.s32 %v640_v10, %v644_v11  ;;  %v279_v42 = vperm.slane %v750_v8, %v736_v1  ;;  %vm281_vm13 = vcmask 24576   ;;  %v296_v43 = vperm.slane %v752_v9, %v736_v1  ;;  %v644_v11 = vphi %v642_v11, %v643_v11   ;;  %v640_v10 = vphi %v638_v10, %v639_v10  }
 0x127   : > { %s766_s22 = scvt.s32.f32 %s763_s21 }
 0x128   : > { %282 = vst.msk [vmem:[%s741_s20] sm:$0x1] %vm281_vm13, %v279_v42 }
 0x129   : > { %s254_s23 = smul.f32 0.75, %s766_s22  ;;  %298 = vst.msk [vmem:[%s741_s20 + $0x4] sm:$0x1] %vm281_vm13, %v296_v43 }
 0x12a   : > { %s230_s25 = smul.f32 0.5, %s766_s22 }
 0x12b   : > { %s255_s26 = sfloor.f32 %s254_s23  ;;  %s206_s27 = smul.f32 0.25, %s766_s22 }
 0x12c   : > { %s773_s28 = scvt.f32.s32 %s255_s26  ;;  %s231_s29 = sfloor.f32 %s230_s25 }
 0x12d   : > { %s777_s30 = scvt.f32.s32 %s231_s29  ;;  %s207_s3 = sfloor.f32 %s206_s27 }
 0x12e   : > { %v262_v24 = vstv %s773_s28  ;;  %s782_s4 = scvt.f32.s32 %s207_s3  ;;  %s259_s5 = sadd.s32 1, %s773_s28 }
 0x12f   : > { %vm263_vm7 = vcmp.eq.s32.totalorder %v203_v23, %v262_v24  ;;  %v238_v25 = vstv %s777_s30  ;;  %p260_p2 = scmp.lt.s32.totalorder %s259_s5, %s763_s21  ;;  %s235_s6 = sadd.s32 1, %s777_s30 }
 0x130   : > { %v264_v26 = vsel %vm263_vm7, %v745_v4, 0.0  ;;  %vm239_vm8 = vcmp.eq.s32.totalorder %v203_v23, %v238_v25  ;;  %v214_v27 = vstv %s782_s4  ;;  %p236_p3 = scmp.lt.s32.totalorder %s235_s6, %s763_s21  ;;  %s211_s7 = sadd.s32 1, %s782_s4 }
 0x131   : > { %v265_v28 = vsel %vm174_vm0, %v264_v26, 0.0  ;;  %v240_v29 = vsel %vm239_vm8, %v745_v4, 0.0  ;;  %vm215_vm9 = vcmp.eq.s32.totalorder %v203_v23, %v214_v27  ;;  %s866_s5 = smov (!%p260_p2, %s259_s5), %s763_s21  ;;  %p212_p4 = scmp.lt.s32.totalorder %s211_s7, %s763_s21 }
 0x132   : > { %266 = vadd.xlane.f32.xlu2 %v265_v28  ;;  %v241_v30 = vsel %vm174_vm0, %v240_v29, 0.0  ;;  %v216_v31 = vsel %vm215_vm9, %v745_v4, 0.0  ;;  %s868_s6 = smov (!%p236_p3, %s235_s6), %s763_s21  ;;  %v268_v33 = vstv %s866_s5  ;;  %s257_s8 = scvt.s32.f32 %s773_s28 }
 0x133   : > { %242 = vadd.xlane.f32.xlu1 %v241_v30  ;;  %v217_v32 = vsel %vm174_vm0, %v216_v31, 0.0  ;;  %vm269_vm10 = vcmp.eq.s32.totalorder %v203_v23, %v268_v33  ;;  %v244_v34 = vstv %s868_s6  ;;  %s233_s9 = scvt.s32.f32 %s777_s30  ;;  %s209_s10 = scvt.s32.f32 %s782_s4 }
 0x134   : > { %218 = vadd.xlane.f32.xlu0 %v217_v32  ;;  %v270_v35 = vsel %vm269_vm10, %v745_v4, 0.0  ;;  %vm245_vm11 = vcmp.eq.s32.totalorder %v203_v23, %v244_v34  ;;  %s870_s7 = smov (!%p212_p4, %s211_s7), %s763_s21  ;;  %s258_s11 = ssub.f32 %s254_s23, %s257_s8 }
 0x135   : > { %v246_v36 = vsel %vm245_vm11, %v745_v4, 0.0  ;;  %v271_v37 = vsel %vm174_vm0, %v270_v35, 0.0  ;;  %v220_v38 = vstv %s870_s7  ;;  %s234_s12 = ssub.f32 %s230_s25, %s233_s9 }
 0x136   : > { %v247_v39 = vsel %vm174_vm0, %v246_v36, 0.0  ;;  %vm221_vm12 = vcmp.eq.s32.totalorder %v203_v23, %v220_v38  ;;  %s210_s13 = ssub.f32 %s206_s27, %s209_s10  ;;  %v275_v47 = vstv %s258_s11 }
 0x137   : > { %v222_v40 = vsel %vm221_vm12, %v745_v4, 0.0  ;;  %v251_v50 = vstv %s234_s12 }
 0x138   : > { %v223_v41 = vsel %vm174_vm0, %v222_v40, 0.0  ;;  %v227_v53 = vstv %s210_s13 }
 0x13a   : > { %272 = vadd.xlane.f32.xlu2 %v271_v37 }
 0x13b   : > { %248 = vadd.xlane.f32.xlu1 %v247_v39 }
 0x13c   : > { %224 = vadd.xlane.f32.xlu0 %v223_v41 }
 0x1a5   : > { %v267_v44 = vpop.xlane.xlu2 %266 }
 0x1a6   : > { %v243_v45 = vpop.xlane.xlu1 %242 }
 0x1a7   : > { %v219_v46 = vpop.xlane.xlu0 %218 }
 0x1ad   : > { %v273_v48 = vpop.xlane.xlu2 %272 }
 0x1ae   : > { %v274_v49 = vsub.f32 %v273_v48, %v267_v44  ;;  %v249_v51 = vpop.xlane.xlu1 %248 }
 0x1af   : > { %v250_v52 = vsub.f32 %v249_v51, %v243_v45  ;;  %v225_v54 = vpop.xlane.xlu0 %224 }
 0x1b0   : > { %v276_v55 = vmul.f32 %v275_v47, %v274_v49  ;;  %v226_v56 = vsub.f32 %v225_v54, %v219_v46 }
 0x1b1   : > { %v252_v57 = vmul.f32 %v251_v50, %v250_v52 }
 0x1b2   : > { %v277_v58 = vadd.f32 %v276_v55, %v267_v44  ;;  %v228_v59 = vmul.f32 %v227_v53, %v226_v56 }
 0x1b3   : > { %v253_v60 = vadd.f32 %v252_v57, %v243_v45 }
 0x1b4   : > { %v292_v61 = vperm.slane %v277_v58, %v736_v1  ;;  %v229_v62 = vadd.f32 %v228_v59, %v219_v46 }
 0x1b5   : > { %v288_v63 = vperm.slane %v253_v60, %v736_v1 }
 0x1b6   : > { %294 = vst.msk [vmem:[%s741_s20 + $0x3] sm:$0x1] %vm281_vm13, %v292_v61  ;;  %v284_v0 = vperm.slane %v229_v62, %v736_v1 }
 0x1b7   : > { %290 = vst.msk [vmem:[%s741_s20 + $0x2] sm:$0x1] %vm281_vm13, %v288_v63 }
 0x1b8   : > { %286 = vst.msk [vmem:[%s741_s20 + $0x1] sm:$0x1] %vm281_vm13, %v284_v0 }
 0x1b9 PF: > { %s23_s18 = sadd.s32 1, %s624_s18   ;;  %s856_s13 = smov %s608_s14 }
 0x1ba   : > { %p20_p5 = scmp.ge.s32.totalorder %s23_s18, 4   ;;  %s857_s14 = smov %s612_s15 }
 0x1bb   : > { %s858_s15 = smov %s715_s24  ;;  %s859_s16 = smov %s620_s17 }
 0x1bc   : > { %s860_s17 = smov %s862_s19  ;;  %22 = sbr.rel (!%p20_p5) target bundleno = 10 (0xa), region = 82 }
 0x1c1   :  { %324 = vsyncpa [#allocation5], 1 }
 0x1c2   :  { %326 = vsyncpa [#allocation5 + $0x1], 1 }

</bundles_post_ra>
